<compile_context>
chip_gen: v5e
topology: v5e:2x2
jax: 0.10.0
libtpu: 0.0.40
codegen_flags: <defaults>
</compile_context>

<pallas_src>
import functools

import jax
import jax.numpy as jnp
from jax.experimental import pallas as pl
from jax.experimental.pallas import tpu as pltpu


def _patch_embed_kernel(x_ref, w_ref, add_ref, cls_ref, o_ref):
    # x_ref:   (bb*N, K)    flattened patches for bb images (f32 or bf16)
    # w_ref:   (K, D)       projection weight (transposed conv weight)
    # add_ref: (N, D)       pos_embedding[1:] + conv_bias          (f32)
    # cls_ref: (1, D)       cls_token + pos_embedding[0]           (f32)
    # o_ref:   (bb, N+1, D) full output block for bb images
    bb, n_plus_1, d = o_ref.shape
    n = n_plus_1 - 1

    # One big MXU matmul over bb*N rows; accumulate in f32.
    y = jnp.dot(x_ref[...], w_ref[...], preferred_element_type=jnp.float32)
    y = y.reshape(bb, n, d) + add_ref[...][None, :, :]

    # Patch-token rows (1..N) and the fused cls row (row 0).
    o_ref[:, 1:, :] = y.astype(o_ref.dtype)
    o_ref[:, 0:1, :] = jnp.broadcast_to(cls_ref[...], (bb, 1, d)).astype(o_ref.dtype)


def _pick_batch_block(B, N, K, D, in_itemsize, out_itemsize,
                      target_rows=128, vmem_budget_bytes=24 * 1024 * 1024):
    """Whole images per grid step: aim for >= target_rows matmul rows while
    keeping the double-buffered blocks well under the smallest (v7x, 64 MiB)
    VMEM.  bb must divide B so Blocked index maps stay exact."""
    bb = min(B, max(1, -(-target_rows // N)))   # ceil(target_rows / N), capped
    while B % bb:
        bb -= 1

    def block_bytes(b):
        streamed = 2 * (b * N * K * in_itemsize + b * (N + 1) * D * out_itemsize)
        resident = 2 * (K * D * in_itemsize + (N + 1) * D * 4)
        return streamed + resident

    while bb > 1 and block_bytes(bb) > vmem_budget_bytes:
        bb -= 1
        while B % bb:
            bb -= 1
    return bb


def patch_embedding_forward(x, conv_w, conv_b, cls_token, pos_embedding,
                            patch_size, *, matmul_dtype=None):
    """x: (B, C, H, W).  Returns (B, num_patches + 1, embed_dim) in x.dtype."""
    B, C, H, W = x.shape
    P = patch_size
    nH, nW = H // P, W // P
    N = nH * nW
    D = conv_w.shape[0]          # embed_dim; conv_w is (D, C, P, P)
    K = C * P * P
    out_dtype = x.dtype

    # --- host glue: extract non-overlapping patches -> (B*N, K) -------------
    # TODO(synk): this transpose still materializes one copy of the input in
    # HBM; folding it into the pallas_call input DMA (allow_input_fusion) or
    # an NCHW gather index_map is left out until validated on all generations.
    patches = x.reshape(B, C, nH, P, nW, P)
    patches = patches.transpose(0, 2, 4, 1, 3, 5)        # (B, nH, nW, C, P, P)
    patches = patches.reshape(B * N, K)

    # conv weight (D, C, P, P) -> (K, D) so that patches @ W == conv output.
    w_mat = conv_w.reshape(D, K).T                       # (K, D)

    if matmul_dtype is not None:                         # bf16 MXU path (v6e/v7x)
        patches = patches.astype(matmul_dtype)
        w_mat = w_mat.astype(matmul_dtype)

    # Bias folded into the patch-token positional rows; cls row precomputed.
    add_patch = (pos_embedding[0, 1:, :] + conv_b[None, :]).astype(jnp.float32)  # (N, D)
    cls_row = (cls_token[0] + pos_embedding[0, :1, :]).astype(jnp.float32)       # (1, D)

    in_itemsize = jnp.dtype(patches.dtype).itemsize
    out_itemsize = jnp.dtype(out_dtype).itemsize
    bb = _pick_batch_block(B, N, K, D, in_itemsize, out_itemsize)

    out = pl.pallas_call(
        _patch_embed_kernel,
        out_shape=jax.ShapeDtypeStruct((B, N + 1, D), out_dtype),
        grid=(B // bb,),
        in_specs=[
            pl.BlockSpec((bb * N, K), lambda i: (i, 0)),     # streamed patch rows
            pl.BlockSpec((K, D), lambda i: (0, 0)),          # resident weight
            pl.BlockSpec((N, D), lambda i: (0, 0)),          # resident pos + bias
            pl.BlockSpec((1, D), lambda i: (0, 0)),          # resident cls row
        ],
        out_specs=pl.BlockSpec((bb, N + 1, D), lambda i: (i, 0, 0)),
        compiler_params=pltpu.CompilerParams(
            dimension_semantics=("parallel",)),              # shardable on v7x's 2 TCs
    )(patches, w_mat, add_patch, cls_row)
    return out


def reference_forward(x, conv_w, conv_b, cls_token, pos_embedding, patch_size):
    """Pure-JAX reference matching the PyTorch module exactly."""
    y = jax.lax.conv_general_dilated(
        x, conv_w,
        window_strides=(patch_size, patch_size),
        padding="VALID",
        dimension_numbers=("NCHW", "OIHW", "NCHW"),
    ) + conv_b[None, :, None, None]
    B, D, nH, nW = y.shape
    y = y.reshape(B, D, nH * nW).transpose(0, 2, 1)      # flatten(2).transpose(1,2)
    cls = jnp.broadcast_to(cls_token, (B, 1, D))
    y = jnp.concatenate([cls, y], axis=1)
    return y + pos_embedding


if __name__ == "__main__":
    # Small shapes consistent with the module: image=16, patch=4, C=4, D=32.
    image_size, patch_size, in_channels, embed_dim = 16, 4, 4, 32
    num_patches = (image_size // patch_size) ** 2        # 16
    B = 2

    key = jax.random.PRNGKey(0)
    k_x, k_w, k_b, k_cls, k_pos = jax.random.split(key, 5)

    x = jax.random.normal(k_x, (B, in_channels, image_size, image_size),
                          dtype=jnp.float32)
    conv_w = jax.random.normal(
        k_w, (embed_dim, in_channels, patch_size, patch_size),
        dtype=jnp.float32) * 0.02
    conv_b = jax.random.normal(k_b, (embed_dim,), dtype=jnp.float32) * 0.02
    cls_token = jax.random.normal(k_cls, (1, 1, embed_dim), dtype=jnp.float32)
    pos_embedding = jax.random.normal(
        k_pos, (1, num_patches + 1, embed_dim), dtype=jnp.float32)

    ref = reference_forward(x, conv_w, conv_b, cls_token, pos_embedding,
                            patch_size)

    # f32 operands (default, tight tolerance).
    fwd_f32 = jax.jit(functools.partial(patch_embedding_forward,
                                        patch_size=patch_size))
    out = jax.block_until_ready(
        fwd_f32(x, conv_w, conv_b, cls_token, pos_embedding))
    assert out.shape == (B, num_patches + 1, embed_dim), out.shape
    assert jnp.allclose(out, ref, atol=1e-4, rtol=1e-4), \
        float(jnp.max(jnp.abs(out - ref)))

    # bf16 matmul operands (v6e/v7x MXU path), f32 accumulation + epilogue.
    fwd_bf16 = jax.jit(functools.partial(patch_embedding_forward,
                                         patch_size=patch_size,
                                         matmul_dtype=jnp.bfloat16))
    out_bf16 = jax.block_until_ready(
        fwd_bf16(x, conv_w, conv_b, cls_token, pos_embedding))
    assert out_bf16.shape == (B, num_patches + 1, embed_dim), out_bf16.shape
    assert jnp.allclose(out_bf16, ref, atol=1e-2, rtol=1e-2), \
        float(jnp.max(jnp.abs(out_bf16 - ref)))

    print("KERNEL_OK")
</pallas_src>

<mosaic_0001>
module attributes {stable_mosaic.version = 11 : i64} {
  func.func @_patch_embed_kernel(%arg0: i32, %arg1: memref<32x64xf32, #tpu.memory_space<vmem>>, %arg2: memref<64x32xf32, #tpu.memory_space<vmem>>, %arg3: memref<16x32xf32, #tpu.memory_space<vmem>>, %arg4: memref<1x32xf32, #tpu.memory_space<vmem>>, %arg5: memref<2x17x32xf32, #tpu.memory_space<vmem>>) attributes {dimension_semantics = [#tpu.dimension_semantics<parallel>], iteration_bounds = array<i64: 1>, scalar_prefetch = 0 : i64, scratch_operands = 0 : i64, tpu.core_type = #tpu.core_type<tc>, window_params = [{transform_indices = @transform_0, window_bounds = array<i64: 32, 64>}, {pipeline_mode = #tpu.pipeline_mode<synchronous>, transform_indices = @transform_1, window_bounds = array<i64: 64, 32>}, {pipeline_mode = #tpu.pipeline_mode<synchronous>, transform_indices = @transform_2, window_bounds = array<i64: 16, 32>}, {pipeline_mode = #tpu.pipeline_mode<synchronous>, transform_indices = @transform_3, window_bounds = array<i64: 1, 32>}, {transform_indices = @transform_4, window_bounds = array<i64: 2, 17, 32>}]} {
    %c0 = arith.constant 0 : index
    %c0_0 = arith.constant 0 : index
    %0 = vector.load %arg1[%c0, %c0_0] : memref<32x64xf32, #tpu.memory_space<vmem>>, vector<32x64xf32>
    %c0_1 = arith.constant 0 : index
    %c0_2 = arith.constant 0 : index
    %1 = vector.load %arg2[%c0_1, %c0_2] : memref<64x32xf32, #tpu.memory_space<vmem>>, vector<64x32xf32>
    %cst = arith.constant dense<0.000000e+00> : vector<32x32xf32>
    %2 = tpu.matmul %0, %1, %cst {dimension_numbers = #tpu.dot_dimension_numbers<[1], [0], [0], [1], [0, 0, 1, 1], [], []>} : vector<32x64xf32>, vector<64x32xf32>, vector<32x32xf32> -> vector<32x32xf32>
    %3 = vector.shape_cast %2 : vector<32x32xf32> to vector<2x16x32xf32>
    %c0_3 = arith.constant 0 : index
    %c0_4 = arith.constant 0 : index
    %4 = vector.load %arg3[%c0_3, %c0_4] : memref<16x32xf32, #tpu.memory_space<vmem>>, vector<16x32xf32>
    %5 = vector.shape_cast %4 : vector<16x32xf32> to vector<1x16x32xf32>
    %6 = vector.broadcast %5 : vector<1x16x32xf32> to vector<2x16x32xf32>
    %7 = arith.addf %3, %6 : vector<2x16x32xf32>
    %c0_5 = arith.constant 0 : index
    %c1 = arith.constant 1 : index
    %c0_6 = arith.constant 0 : index
    %8 = vector.load %arg5[%c0_5, %c1, %c0_6] : memref<2x17x32xf32, #tpu.memory_space<vmem>>, vector<2x16x32xf32>
    tpu.vector_store %arg5[%c0_5, %c1, %c0_6], %7 {strides = array<i32>} : memref<2x17x32xf32, #tpu.memory_space<vmem>>, vector<2x16x32xf32>,
    %c0_7 = arith.constant 0 : index
    %c0_8 = arith.constant 0 : index
    %9 = vector.load %arg4[%c0_7, %c0_8] : memref<1x32xf32, #tpu.memory_space<vmem>>, vector<1x32xf32>
    %10 = vector.shape_cast %9 : vector<1x32xf32> to vector<1x1x32xf32>
    %11 = vector.broadcast %10 : vector<1x1x32xf32> to vector<2x1x32xf32>
    %c0_9 = arith.constant 0 : index
    %c0_10 = arith.constant 0 : index
    %c0_11 = arith.constant 0 : index
    %12 = vector.load %arg5[%c0_9, %c0_10, %c0_11] : memref<2x17x32xf32, #tpu.memory_space<vmem>>, vector<2x1x32xf32>
    tpu.vector_store %arg5[%c0_9, %c0_10, %c0_11], %11 {strides = array<i32>} : memref<2x17x32xf32, #tpu.memory_space<vmem>>, vector<2x1x32xf32>,
    return
  }
  func.func @transform_0(%arg0: i32) -> (i32, i32) {
    %c0_i32 = arith.constant 0 : i32
    %c0_i32_0 = arith.constant 0 : i32
    return %arg0, %c0_i32 : i32, i32
  }
  func.func @transform_1(%arg0: i32) -> (i32, i32) {
    %c0_i32 = arith.constant 0 : i32
    %c0_i32_0 = arith.constant 0 : i32
    %c0_i32_1 = arith.constant 0 : i32
    return %c0_i32, %c0_i32_0 : i32, i32
  }
  func.func @transform_2(%arg0: i32) -> (i32, i32) {
    %c0_i32 = arith.constant 0 : i32
    %c0_i32_0 = arith.constant 0 : i32
    %c0_i32_1 = arith.constant 0 : i32
    return %c0_i32, %c0_i32_0 : i32, i32
  }
  func.func @transform_3(%arg0: i32) -> (i32, i32) {
    %c0_i32 = arith.constant 0 : i32
    %c0_i32_0 = arith.constant 0 : i32
    %c0_i32_1 = arith.constant 0 : i32
    return %c0_i32, %c0_i32_0 : i32, i32
  }
  func.func @transform_4(%arg0: i32) -> (i32, i32, i32) {
    %c0_i32 = arith.constant 0 : i32
    %c0_i32_0 = arith.constant 0 : i32
    %c0_i32_1 = arith.constant 0 : i32
    return %arg0, %c0_i32, %c0_i32_0 : i32, i32, i32
  }
}

</mosaic_0001>

<bundles_post_ra>
// kernel: patch_embedding_forward.1
= control target key start
LH: loop header
LB: loop body
LE: loop exit
PB: predicated region body
PF: predicated region fallthrough
CT: control target
= control target key end

     0   :  { %vm29_vm0 = vcmask 523264   ;;  %vm83_vm1 = vcmask 253952   ;;  %vm77_vm2 = vcmask 261120   ;;  %s206_s1 = inlined_call_operand.vmem [shape: f32[64,32], index: 1, kind: input, shape index: {}]   ;;  %s207_s0 = inlined_call_operand.vmem [shape: f32[32,64], index: 0, kind: input, shape index: {}]   ;;  %s208_s3 = inlined_call_operand.vmem [shape: f32[1,32], index: 3, kind: input, shape index: {}]   ;;  %s209_s4 = inlined_call_operand.vmem [shape: f32[2,17,32], index: 4, kind: output, shape index: {}]   ;;  %s210_s2 = inlined_call_operand.vmem [shape: f32[16,32], index: 2, kind: input, shape index: {}]  }
   0x1   :  { %v28_v0 = vld [vmem:[%s206_s1 + $0x38] sm:$0xff]  ;;  %v27_v1 = vld [vmem:[%s206_s1 + $0x30] sm:$0xff]  ;;  %v26_v2 = vld [vmem:[%s206_s1 + $0x28] sm:$0xff] }
   0x2   :  { %95 = vmatpush.msra.mxu2 %v28_v0  ;;  %96 = vmatpush.msra.mxu3 %v28_v0  ;;  %v25_v3 = vld [vmem:[%s206_s1 + $0x20] sm:$0xff]  ;;  %v24_v4 = vld [vmem:[%s206_s1 + $0x18] sm:$0xff]  ;;  %v23_v5 = vld [vmem:[%s206_s1 + $0x10] sm:$0xff] }
   0x3   :  { %50 = vmatpush.msra.mxu0 %v28_v0  ;;  %94 = vmatpush.msra.mxu1 %v28_v0  ;;  %v22_v6 = vld [vmem:[%s206_s1 + $0x8] sm:$0xff]  ;;  %v21_v7 = vld [vmem:[%s206_s1] sm:$0xff]  ;;  %v19_v8 = vld [vmem:[%s207_s0 + $0x10] sm:$0xff] }
   0x4   :  { %98 = vmatpush.msra.mxu2 %v27_v1  ;;  %99 = vmatpush.msra.mxu3 %v27_v1  ;;  %v20_v9 = vld [vmem:[%s207_s0 + $0x18] sm:$0xff]  ;;  %v17_v10 = vld [vmem:[%s207_s0] sm:$0xff]  ;;  %v18_v11 = vld [vmem:[%s207_s0 + $0x8] sm:$0xff] }
   0x5   :  { %51 = vmatpush.msra.mxu0 %v27_v1  ;;  %97 = vmatpush.msra.mxu1 %v27_v1  ;;  %v82_v12 = vld [vmem:[%s208_s3] sm:$0x1]  ;;  %v72_v14 = vld [vmem:[%s210_s2 + $0x8] sm:$0xff] }
   0x6   :  { %101 = vmatpush.msra.mxu2 %v26_v2  ;;  %102 = vmatpush.msra.mxu3 %v26_v2  ;;  %84 = vst.msk [vmem:[%s209_s4] sm:$0x1] %vm83_vm1, %v82_v12  ;;  %v71_v13 = vld [vmem:[%s210_s2] sm:$0xff] }
   0x7   :  { %52 = vmatpush.msra.mxu0 %v26_v2  ;;  %100 = vmatpush.msra.mxu1 %v26_v2  ;;  %85 = vst.msk [vmem:[%s209_s4 + $0x18] sm:$0x1] %vm83_vm1, %v82_v12 }
   0x8   :  { %104 = vmatpush.msra.mxu2 %v25_v3  ;;  %105 = vmatpush.msra.mxu3 %v25_v3 }
   0x9   :  { %53 = vmatpush.msra.mxu0 %v25_v3  ;;  %103 = vmatpush.msra.mxu1 %v25_v3 }
   0xa   :  { %107 = vmatpush.msra.mxu2 %v24_v4  ;;  %108 = vmatpush.msra.mxu3 %v24_v4 }
   0xb   :  { %54 = vmatpush.msra.mxu0 %v24_v4  ;;  %106 = vmatpush.msra.mxu1 %v24_v4 }
   0xc   :  { %110 = vmatpush.msra.mxu2 %v23_v5  ;;  %111 = vmatpush.msra.mxu3 %v23_v5 }
   0xd   :  { %55 = vmatpush.msra.mxu0 %v23_v5  ;;  %109 = vmatpush.msra.mxu1 %v23_v5 }
   0xe   :  { %113 = vmatpush.msra.mxu2 %v22_v6  ;;  %114 = vmatpush.msra.mxu3 %v22_v6 }
   0xf   :  { %56 = vmatpush.msra.mxu0 %v22_v6  ;;  %112 = vmatpush.msra.mxu1 %v22_v6 }
  0x10   :  { %116 = vmatpush.msra.mxu2 %v21_v7  ;;  %117 = vmatpush.msra.mxu3 %v21_v7 }
  0x11   :  { %92 = vmatmul.msk.f32.vlgmr.msra.gmra.mxu2 %vm29_vm0, %v19_v8  ;;  %93 = vmatmul.msk.f32.vlgmr.msra.gmra.mxu3 %vm29_vm0, %v20_v9 }
  0x12   :  { %57 = vmatpush.msra.mxu0 %v21_v7  ;;  %115 = vmatpush.msra.mxu1 %v21_v7 }
  0x13   :  { %90 = vmatmul.msk.f32.vlgmr.msra.gmra.mxu0 %vm29_vm0, %v17_v10  ;;  %91 = vmatmul.msk.f32.vlgmr.msra.gmra.mxu1 %vm29_vm0, %v18_v11 }
  0x90   :  { %v59_v15 = vpop.f32.mrf.mxu0  ;;  %v62_v16 = vpop.f32.mrf.mxu1 }
  0x91   :  { %v73_v17 = vadd.f32 %v71_v13, %v59_v15  ;;  %v74_v18 = vadd.f32 %v72_v14, %v62_v16 }
  0x93   :  { %78 = vst.msk [vmem:[%s209_s4 + $0x1] sm:$0xff] %vm77_vm2, %v73_v17 }
  0x94   :  { %79 = vst.msk [vmem:[%s209_s4 + $0x9] sm:$0xff] %vm77_vm2, %v74_v18  ;;  %v65_v19 = vpop.f32.mrf.mxu2  ;;  %v68_v20 = vpop.f32.mrf.mxu3 }
  0x95   :  { %v75_v21 = vadd.f32 %v71_v13, %v65_v19  ;;  %v76_v22 = vadd.f32 %v72_v14, %v68_v20 }
  0x97   :  { %80 = vst.msk [vmem:[%s209_s4 + $0x19] sm:$0xff] %vm77_vm2, %v75_v21 }
  0x98   :  { %81 = vst.msk [vmem:[%s209_s4 + $0x21] sm:$0xff] %vm77_vm2, %v76_v22 }

</bundles_post_ra>
